<compile_context>
chip_gen: v7x
topology: tpu7x:2x2x1
jax: 0.10.0
libtpu: 0.0.40
codegen_flags: <defaults>
</compile_context>

<pallas_src>
import functools

import numpy as np
import jax
import jax.numpy as jnp
from jax.experimental import pallas as pl
from jax.experimental.pallas import tpu as pltpu


def _gcn_kernel(x_ref, am_ref, w_ref, b_ref, o_ref, *, activation, bb, lp):
    a = am_ref[...]                                   # (Bb, Lp, Lp)
    x = x_ref[...]                                    # (Bb, Lp, N_in)

    # Per-sequence graph aggregation A @ X, batched over the Bb sequences of
    # this block.  Padded rows/cols of A and padded rows of X are zero, so the
    # first L_j rows equal am[j, :L_j, :L_j] @ x_seq exactly; the rest is
    # discarded by the unpad gather in the wrapper.
    agg = jax.lax.dot_general(
        a, x, dimension_numbers=(((2,), (1,)), ((0,), (0,))),
        preferred_element_type=jnp.float32)           # (Bb, Lp, N_in)

    # 1x1 Conv2d with BatchNorm folded in: one big matmul over all Bb*Lp nodes
    # (fills the MXU M dimension; weights carry BN scale, bias carries shift).
    agg2 = agg.reshape(bb * lp, agg.shape[-1])        # Lp % 8 == 0 -> cheap reshape
    y = jnp.dot(agg2, w_ref[...],
                preferred_element_type=jnp.float32) + b_ref[...]

    if activation == "relu":
        y = jnp.maximum(y, 0.0)
    elif activation == "leaky_relu":
        y = jnp.where(y >= 0.0, y, 0.01 * y)

    o_ref[...] = y.astype(o_ref.dtype)                # (Bb*Lp, N_out_pad), lane-dense


def init_params(key, n_in, n_out):
    # Conv2d(n_in, n_out, 1) parameters, PyTorch-style uniform bounds.
    k_w, k_b = jax.random.split(key)
    bound = 1.0 / (n_in ** 0.5)
    w = jax.random.uniform(k_w, (n_out, n_in, 1, 1), jnp.float32, -bound, bound)
    b = jax.random.uniform(k_b, (n_out,), jnp.float32, -bound, bound)
    return dict(
        weight=w,
        bias=b,
        # BatchNorm2d defaults: gamma=1, beta=0, running_mean=0, running_var=1.
        bn_gamma=jnp.ones((n_out,), jnp.float32),
        bn_beta=jnp.zeros((n_out,), jnp.float32),
        bn_mean=jnp.zeros((n_out,), jnp.float32),
        bn_var=jnp.ones((n_out,), jnp.float32),
        bn_eps=1e-5,
    )


def _round_up(x, m):
    return (x + m - 1) // m * m


def _pick_block_batch(batch, lp, n_in, n_out_pad, itemsize=4,
                      vmem_budget_bytes=8 * 1024 * 1024):
    # One pipeline buffer's footprint per sequence (x + am + out blocks).
    per_seq = itemsize * (lp * n_in + lp * lp + lp * n_out_pad)
    bb = max(1, min(batch, vmem_budget_bytes // max(per_seq, 1)))
    # Keep >= 2 grid blocks when the batch allows (v7x has two TensorCores).
    if batch >= 2:
        bb = min(bb, max(1, (batch + 1) // 2))
    return bb


def graph_conv_layer(x, ld, am, params, activation=None):
    """x: [sum_L, N_in, 1, 1]; ld: python list of ints; am: [B, L_max, L_max].
    Returns [sum_L, N_out, 1, 1]."""
    sum_l, n_in = x.shape[0], x.shape[1]
    assert sum(ld) == sum_l
    batch = len(ld)
    l_max = am.shape[1]

    w = params["weight"]
    n_out = w.shape[0]

    # ---- static sizing ----
    lp = _round_up(max(l_max, 8), 8)            # sublane-aligned sequence length
    n_out_pad = _round_up(n_out, 128)           # lane-dense output stores
    bb = _pick_block_batch(batch, lp, n_in, n_out_pad, x.dtype.itemsize)
    batch_pad = _round_up(batch, bb)
    grid = (batch_pad // bb,)

    # ---- glue: fold BatchNorm (eval mode) into the conv weight/bias ----
    scale = params["bn_gamma"] * jax.lax.rsqrt(params["bn_var"] + params["bn_eps"])
    shift = params["bn_beta"] - params["bn_mean"] * scale
    wt = jnp.transpose(w.reshape(n_out, n_in)) * scale[None, :]      # [N_in, N_out]
    bf = params["bias"] * scale + shift                              # [N_out]
    wt = jnp.pad(wt, ((0, 0), (0, n_out_pad - n_out)))
    bf = jnp.pad(bf, (0, n_out_pad - n_out)).reshape(1, n_out_pad)
    # TODO(synk): train-mode BatchNorm (per-batch statistics over all sum_L
    # nodes) not implemented; this reproduces eval-mode BN with running stats.
    # Dropout(p>0) is an inference identity and therefore omitted.

    # ---- glue: single-gather pad of the ragged node features ----
    x_flat = x.reshape(sum_l, n_in)
    x_flat_z = jnp.concatenate([x_flat, jnp.zeros((1, n_in), x.dtype)], axis=0)
    offsets = np.concatenate([[0], np.cumsum(ld)]).astype(np.int64)
    pad_idx = np.full((batch_pad, lp), sum_l, dtype=np.int32)        # -> zero row
    for j, seq_len in enumerate(ld):
        pad_idx[j, :seq_len] = offsets[j] + np.arange(seq_len)
    x_pad = jnp.take(x_flat_z, jnp.asarray(pad_idx.reshape(-1)),
                     axis=0).reshape(batch_pad, lp, n_in)

    am_pad = jnp.pad(
        am, ((0, batch_pad - batch), (0, lp - l_max), (0, lp - l_max)))

    out_pad = pl.pallas_call(
        functools.partial(_gcn_kernel, activation=activation, bb=bb, lp=lp),
        out_shape=jax.ShapeDtypeStruct((batch_pad * lp, n_out_pad), x.dtype),
        grid_spec=pltpu.PrefetchScalarGridSpec(
            num_scalar_prefetch=0,
            grid=grid,
            in_specs=[
                pl.BlockSpec((bb, lp, n_in), lambda g: (g, 0, 0)),    # x_pad
                pl.BlockSpec((bb, lp, lp), lambda g: (g, 0, 0)),      # adjacency
                pl.BlockSpec((n_in, n_out_pad), lambda g: (0, 0)),    # folded W^T
                pl.BlockSpec((1, n_out_pad), lambda g: (0, 0)),       # folded bias
            ],
            out_specs=pl.BlockSpec((bb * lp, n_out_pad), lambda g: (g, 0)),
        ),
        compiler_params=pltpu.CompilerParams(
            dimension_semantics=("parallel",),
            vmem_limit_bytes=32 * 1024 * 1024),
    )(x_pad, am_pad, wt, bf)

    # ---- glue: single-gather unpad back to [sum_L, N_out, 1, 1] ----
    unpad_idx = np.concatenate(
        [j * lp + np.arange(seq_len) for j, seq_len in enumerate(ld)]
    ).astype(np.int32)
    out = jnp.take(out_pad, jnp.asarray(unpad_idx), axis=0)[:, :n_out]
    return out.reshape(sum_l, n_out, 1, 1)


def _reference(x, ld, am, params, activation):
    """Pure-JAX reference matching the PyTorch module (eval-mode BN)."""
    x2 = x.reshape(x.shape[0], x.shape[1])
    outs, prev = [], 0
    for j, seq_len in enumerate(ld):
        seg = x2[prev:prev + seq_len]
        outs.append(am[j, :seq_len, :seq_len] @ seg)
        prev += seq_len
    agg = jnp.concatenate(outs, axis=0)
    w2 = params["weight"].reshape(params["weight"].shape[0], -1)
    y = agg @ w2.T + params["bias"][None, :]
    scale = params["bn_gamma"] / jnp.sqrt(params["bn_var"] + params["bn_eps"])
    y = (y - params["bn_mean"][None, :]) * scale[None, :] + params["bn_beta"][None, :]
    if activation == "relu":
        y = jnp.maximum(y, 0.0)
    elif activation == "leaky_relu":
        y = jnp.where(y >= 0.0, y, 0.01 * y)
    return y.reshape(y.shape[0], y.shape[1], 1, 1)


if __name__ == "__main__":
    key = jax.random.PRNGKey(0)
    k_x, k_am, k_p = jax.random.split(key, 3)

    n_in, n_out = 16, 32
    ld = [6, 8]                      # ragged sequence lengths
    batch, l_max, sum_l = len(ld), max(ld), sum(ld)

    x = jax.random.normal(k_x, (sum_l, n_in, 1, 1), jnp.float32)
    am = jax.random.normal(k_am, (batch, l_max, l_max), jnp.float32)
    params = init_params(k_p, n_in, n_out)

    out = graph_conv_layer(x, ld, am, params, activation="relu")
    jax.block_until_ready(out)
    assert out.shape == (sum_l, n_out, 1, 1)

    ref = _reference(x, ld, am, params, activation="relu")
    assert jnp.allclose(out, ref, rtol=1e-2, atol=1e-2), \
        float(jnp.max(jnp.abs(out - ref)))

    print("KERNEL_OK")
</pallas_src>

<mosaic_0001>
module attributes {stable_mosaic.version = 11 : i64} {
  func.func @_gcn_kernel(%arg0: i32, %arg1: memref<1x8x16xf32, #tpu.memory_space<vmem>>, %arg2: memref<1x8x8xf32, #tpu.memory_space<vmem>>, %arg3: memref<16x128xf32, #tpu.memory_space<vmem>>, %arg4: memref<1x128xf32, #tpu.memory_space<vmem>>, %arg5: memref<8x128xf32, #tpu.memory_space<vmem>>) attributes {dimension_semantics = [#tpu.dimension_semantics<parallel>], iteration_bounds = array<i64: 2>, scalar_prefetch = 0 : i64, scratch_operands = 0 : i64, tpu.core_type = #tpu.core_type<tc>, window_params = [{transform_indices = @transform_0, window_bounds = array<i64: 1, 8, 16>}, {transform_indices = @transform_1, window_bounds = array<i64: 1, 8, 8>}, {pipeline_mode = #tpu.pipeline_mode<synchronous>, transform_indices = @transform_2, window_bounds = array<i64: 16, 128>}, {pipeline_mode = #tpu.pipeline_mode<synchronous>, transform_indices = @transform_3, window_bounds = array<i64: 1, 128>}, {transform_indices = @transform_4, window_bounds = array<i64: 8, 128>}]} {
    %c0 = arith.constant 0 : index
    %c0_0 = arith.constant 0 : index
    %c0_1 = arith.constant 0 : index
    %0 = vector.load %arg2[%c0, %c0_0, %c0_1] : memref<1x8x8xf32, #tpu.memory_space<vmem>>, vector<1x8x8xf32>
    %c0_2 = arith.constant 0 : index
    %c0_3 = arith.constant 0 : index
    %c0_4 = arith.constant 0 : index
    %1 = vector.load %arg1[%c0_2, %c0_3, %c0_4] : memref<1x8x16xf32, #tpu.memory_space<vmem>>, vector<1x8x16xf32>
    %cst = arith.constant dense<0.000000e+00> : vector<1x8x16xf32>
    %2 = tpu.matmul %0, %1, %cst {dimension_numbers = #tpu.dot_dimension_numbers<[2], [1], [1], [2], [0, 0, 0, 1, 1, 2], [0], [0]>} : vector<1x8x8xf32>, vector<1x8x16xf32>, vector<1x8x16xf32> -> vector<1x8x16xf32>
    %3 = vector.shape_cast %2 : vector<1x8x16xf32> to vector<8x16xf32>
    %c0_5 = arith.constant 0 : index
    %c0_6 = arith.constant 0 : index
    %4 = vector.load %arg3[%c0_5, %c0_6] : memref<16x128xf32, #tpu.memory_space<vmem>>, vector<16x128xf32>
    %cst_7 = arith.constant dense<0.000000e+00> : vector<8x128xf32>
    %5 = tpu.matmul %3, %4, %cst_7 {dimension_numbers = #tpu.dot_dimension_numbers<[1], [0], [0], [1], [0, 0, 1, 1], [], []>} : vector<8x16xf32>, vector<16x128xf32>, vector<8x128xf32> -> vector<8x128xf32>
    %c0_8 = arith.constant 0 : index
    %c0_9 = arith.constant 0 : index
    %6 = vector.load %arg4[%c0_8, %c0_9] : memref<1x128xf32, #tpu.memory_space<vmem>>, vector<1x128xf32>
    %7 = vector.broadcast %6 : vector<1x128xf32> to vector<8x128xf32>
    %8 = arith.addf %5, %7 : vector<8x128xf32>
    %cst_10 = arith.constant 0.000000e+00 : f32
    %9 = vector.broadcast %cst_10 : f32 to vector<8x128xf32>
    %10 = arith.maximumf %8, %9 : vector<8x128xf32>
    %c0_11 = arith.constant 0 : index
    %c0_12 = arith.constant 0 : index
    %11 = vector.load %arg5[%c0_11, %c0_12] : memref<8x128xf32, #tpu.memory_space<vmem>>, vector<8x128xf32>
    tpu.vector_store %arg5[%c0_11, %c0_12], %10 {strides = array<i32>} : memref<8x128xf32, #tpu.memory_space<vmem>>, vector<8x128xf32>,
    return
  }
  func.func @transform_0(%arg0: i32) -> (i32, i32, i32) {
    %c0_i32 = arith.constant 0 : i32
    %c0_i32_0 = arith.constant 0 : i32
    %c0_i32_1 = arith.constant 0 : i32
    return %arg0, %c0_i32, %c0_i32_0 : i32, i32, i32
  }
  func.func @transform_1(%arg0: i32) -> (i32, i32, i32) {
    %c0_i32 = arith.constant 0 : i32
    %c0_i32_0 = arith.constant 0 : i32
    %c0_i32_1 = arith.constant 0 : i32
    return %arg0, %c0_i32, %c0_i32_0 : i32, i32, i32
  }
  func.func @transform_2(%arg0: i32) -> (i32, i32) {
    %c0_i32 = arith.constant 0 : i32
    %c0_i32_0 = arith.constant 0 : i32
    %c0_i32_1 = arith.constant 0 : i32
    return %c0_i32, %c0_i32_0 : i32, i32
  }
  func.func @transform_3(%arg0: i32) -> (i32, i32) {
    %c0_i32 = arith.constant 0 : i32
    %c0_i32_0 = arith.constant 0 : i32
    %c0_i32_1 = arith.constant 0 : i32
    return %c0_i32, %c0_i32_0 : i32, i32
  }
  func.func @transform_4(%arg0: i32) -> (i32, i32) {
    %c0_i32 = arith.constant 0 : i32
    %c0_i32_0 = arith.constant 0 : i32
    return %arg0, %c0_i32 : i32, i32
  }
}

</mosaic_0001>

<bundles_post_ra>
// kernel: tpu_custom_call.1
= control target key start
LH: loop header
LB: loop body
LE: loop exit
PB: predicated region body
PF: predicated region fallthrough
CT: control target
= control target key end

     0   :  { %s1084_s0 = inlined_call_operand.hbm [shape: f32[2,8,16], index: 0, kind: input, shape index: {}]   ;;  %s1085_s1 = inlined_call_operand.hbm [shape: f32[2,8,8], index: 1, kind: input, shape index: {}]   ;;  %s1086_s2 = inlined_call_operand.hbm [shape: f32[16,128], index: 2, kind: input, shape index: {}]   ;;  %s1087_s3 = inlined_call_operand.vmem [shape: f32[1,128], index: 3, kind: input, shape index: {}]   ;;  %s1088_s4 = inlined_call_operand.hbm [shape: f32[16,128], index: 4, kind: output, shape index: {}]  }
   0x1   :  { %1093 = sst [smem:[#allocation13_spill]] %s1086_s2 }
   0x2   :  { %9 = vsyncpa [#allocation3], 0 }
   0x3   :  { %11 = vsyncpa [#allocation3 + $0x1], 0 }
   0x4   :  { %12 = vsyncpa [#allocation6], 0 }
   0x5   :  { %14 = vsyncpa [#allocation6 + $0x1], 0 }
   0x6   :  { %15 = vsyncpa [#allocation4], 0 }
   0x7   :  { %17 = vsyncpa [#allocation4 + $0x1], 0  ;;  %s846_s15 = smov 0   ;;  %s848_s16 = smov 0  }
   0x8   :  { %s850_s17 = smov 0   ;;  %s852_s18 = smov 0  }
   0x9 LB: > { %s867_s19 = sadd.s32 4294967295, %s810_s18   ;;  %s541_s20 = sadd.s32 4294967294, %s810_s18   ;;  %s810_s18 = sphi %s852_s18, %s1112_s18   ;;  %s806_s17 = sphi %s850_s17, %s1111_s17   ;;  %s802_s16 = sphi %s848_s16, %s1110_s16   ;;  %s798_s15 = sphi %s846_s15, %s1109_s15  }
   0xa   : > { %p43_p0 = scmp.ne.s32.totalorder %s802_s16, %s798_s15  ;;  %p1089_p1 = scmp.eq.s32.totalorder %s867_s19, 0 }
   0xb   : > { %p141_p3 = scmp.eq.s32.totalorder %s541_s20, 1  ;;  %p542_p5 = scmp.ge.s32.totalorder %s810_s18, 1 }
   0xc   : > { %p876_p4 = por %p1089_p1, %p43_p0  ;;  %p148_p7 = scmp.lt.s32.totalorder %s810_s18, 3 }
   0xd   : > { %p881_p6 = por %p141_p3, %p43_p0  ;;  %s812_s24 = smov [#allocation7]  }
   0xe   : > { %s1094_s21 = scalar_select %p876_p4, 1, 0 }
   0xf   : > { %s1095_s22 = scalar_select %p881_p6, 1, 0 }
  0x10   : > { %p886_p8 = pnand %p542_p5, %p148_p7  ;;  %s160_s25 = sshll.u32 %s812_s24, 4  ;;  %s890_s25 = int_to_ptr.vmem [resolvable:$true] %s160_s25 }
  0x11   : > { %s902_s27 = sadd.s32 1, %s810_s18   ;;  %s30_s28 = sadd.s32 1, %s806_s17 }
  0x12   : > { %s1096_s23 = scalar_select %p886_p8, 1, 0 }
  0x13   : > { %p591_p9 = pneg %p886_p8  ;;  %s27_s29 = ssub.s32 %s810_s18, %s902_s27 }
  0x14   : > { %s1098_s2 = sld [smem:[#allocation13_spill]] }
  0x15   : > { %p897_p11 = pnand %p591_p9, %p1089_p1 }
  0x17   : > { %p650_p13 = pneg %p897_p11 }
  0x1a   : > { %s648_s6 = scalar_lea.hbm %s1098_s2, 256 }
  0x1b   : > { %p649_p12 = scmp.ne.s32.totalorder %s1098_s2, %s648_s6  ;;  %p655_p5 = scmp.lt.u32.totalorder %s648_s6, %s1098_s2 }
  0x1d   : > { %p651_p0 = pnand %p650_p13, %p649_p12 }
  0x1f   : > { %p652_p3 = pneg %p651_p0 }
  0x21   : > { %p657_p7 = pnand %p655_p5, %p652_p3 }
  0x23   : > { %660 = shalt.err (!%p657_p7)
}
  0x24   : > { %s661_s11 = scalar_lea.vmem %s890_s25, 256  ;;  %p669_p2 = scmp.lt.s32.totalorder %s890_s25, %s890_s25 }
  0x25   : > { %p662_p9 = scmp.ne.s32.totalorder %s890_s25, %s661_s11  ;;  %p670_p6 = scmp.lt.s32.totalorder %s661_s11, %s661_s11 }
  0x27   : > { %p664_p10 = pnand %p662_p9, %p650_p13  ;;  %p671_p4 = por %p670_p6, %p669_p2 }
  0x29   : > { %p665_p1 = pneg %p664_p10 }
  0x2b   : > { %p672_p8 = pnand %p671_p4, %p665_p1 }
  0x2d   : > { %675 = shalt.err (!%p672_p8)
}
  0x2e   : > { %s813_s12 = smov 128   ;;  %s814_s13 = smov 8  }
  0x2f   : > { %594 = dma.hbm_to_vmem [thread:$0]  (!%p897_p11), %s1098_s2, 256, %s890_s25, [#allocation6], %s813_s12, %s813_s12, %s814_s13  }
  0x30   : > { %p28_p2 = scmp.eq.s32.totalorder %s27_s29, 0  ;;  %p37_p1 = scmp.ne.s32.totalorder %s806_s17, %s802_s16 }
  0x31   : > { %p38_p4 = scmp.eq.s32.totalorder %s810_s18, 0  ;;  %p607_p6 = scmp.lt.s32.totalorder %s810_s18, 2 }
  0x32   : > { %s933_s24 = scalar_select %p28_p2, %s806_s17, %s30_s28  }
  0x33   : > { %p39_p8 = por %p38_p4, %p37_p1  ;;  %p1099_p10 = scmp.eq.s32.totalorder %s867_s19, 1 }
  0x34   : > { %s177_s5 = sand.u32 1, %s806_s17   ;;  %s546_s6 = sshll.u32 %s810_s18, 7 }
  0x35   : > { %p937_p12 = por %p1099_p10, %p37_p1  ;;  %s943_s7 = sshll.u32 %s177_s5, 3 }
  0x36   : > { %s948_s25 = scalar_lea.hbm %s1084_s0, %s546_s6  ;;  %s181_s28 = scalar_lea.vmem [#allocation2], %s943_s7 }
  0x37   : > { %s1100_s30 = scalar_select %p937_p12, 1, 0 }
  0x38   : > { %s188_s29 = sshll.u32 %s181_s28, 4  ;;  %p951_p11 = pnand %p607_p6, %p39_p8  ;;  %s955_s29 = int_to_ptr.vmem [resolvable:$true] %s188_s29 }
  0x39   : > { %s960_s12 = scalar_lea.hbm %s1085_s1, %s546_s6  ;;  %s178_s13 = scalar_lea.sflag [#allocation3], %s177_s5 }
  0x3a   : > { %s676_s14 = scalar_lea.hbm %s948_s25, 128  ;;  %p678_p0 = pneg %p951_p11 }
  0x3b   : > { %p677_p13 = scmp.ne.s32.totalorder %s948_s25, %s676_s14  ;;  %s681_s8 = scalar_lea.hbm %s1084_s0, 256 }
  0x3c   : > { %p682_p7 = scmp.lt.u32.totalorder %s948_s25, %s1084_s0  ;;  %p683_p9 = scmp.lt.u32.totalorder %s681_s8, %s676_s14 }
  0x3d   : > { %p679_p3 = pnand %p678_p0, %p677_p13  ;;  %p685_p1 = scmp.lt.u32.totalorder %s676_s14, %s948_s25 }
  0x3e   : > { %p684_p2 = por %p683_p9, %p682_p7 }
  0x3f   : > { %p680_p5 = pneg %p679_p3 }
  0x40   : > { %p686_p4 = por %p685_p1, %p684_p2 }
  0x42   : > { %p687_p6 = pnand %p686_p4, %p680_p5 }
  0x44   : > { %690 = shalt.err (!%p687_p6)
}
  0x45   : > { %s691_s5 = scalar_lea.vmem %s955_s29, 128  ;;  %s815_s6 = smov [#allocation2]  }
  0x46   : > { %p692_p8 = scmp.ne.s32.totalorder %s955_s29, %s691_s5  ;;  %s696_s10 = sshll.u32 %s815_s6, 4  ;;  %s697_s10 = int_to_ptr.vmem [resolvable:$false] %s696_s10 }
  0x47   : > { %s698_s2 = scalar_lea.vmem %s697_s10, 256  ;;  %p699_p3 = scmp.lt.s32.totalorder %s955_s29, %s697_s10 }
  0x48   : > { %p694_p10 = pnand %p692_p8, %p678_p0  ;;  %p700_p7 = scmp.lt.s32.totalorder %s698_s2, %s691_s5 }
  0x4a   : > { %p695_p13 = pneg %p694_p10  ;;  %p701_p9 = por %p700_p7, %p699_p3 }
  0x4c   : > { %p702_p2 = pnand %p701_p9, %p695_p13 }
  0x4e   : > { %705 = shalt.err (!%p702_p2)
}
  0x4f   : > { %598 = dma.hbm_to_vmem [thread:$0]  (!%p951_p11), %s948_s25, 128, %s955_s29, %s178_s13  }
  0x50   : > { %s195_s11 = sand.u32 1, %s810_s18   ;;  %s199_s14 = scalar_lea.vmem [#allocation5], %s943_s7 }
  0x51   : > { %s206_s20 = sshll.u32 %s199_s14, 4  ;;  %s196_s26 = scalar_lea.sflag [#allocation6], %s195_s11  ;;  %s207_s20 = int_to_ptr.vmem [resolvable:$true] %s206_s20 }
  0x52   : > { %s706_s8 = scalar_lea.hbm %s960_s12, 128  ;;  %s711_s6 = scalar_lea.hbm %s1085_s1, 256 }
  0x53   : > { %p707_p5 = scmp.ne.s32.totalorder %s960_s12, %s706_s8  ;;  %p712_p6 = scmp.lt.u32.totalorder %s960_s12, %s1085_s1 }
  0x54   : > { %p713_p8 = scmp.lt.u32.totalorder %s711_s6, %s706_s8  ;;  %p715_p13 = scmp.lt.u32.totalorder %s706_s8, %s960_s12 }
  0x55   : > { %p709_p1 = pnand %p707_p5, %p678_p0 }
  0x56   : > { %p714_p10 = por %p713_p8, %p712_p6 }
  0x57   : > { %p710_p4 = pneg %p709_p1 }
  0x58   : > { %p716_p3 = por %p715_p13, %p714_p10 }
  0x5a   : > { %p717_p7 = pnand %p716_p3, %p710_p4 }
  0x5c   : > { %720 = shalt.err (!%p717_p7)
}
  0x5d   : > { %s721_s7 = scalar_lea.vmem %s207_s20, 128  ;;  %s816_s25 = smov [#allocation5]  }
  0x5e   : > { %p722_p9 = scmp.ne.s32.totalorder %s207_s20, %s721_s7  ;;  %s726_s29 = sshll.u32 %s816_s25, 4  ;;  %s727_s29 = int_to_ptr.vmem [resolvable:$false] %s726_s29 }
  0x5f   : > { %s728_s13 = scalar_lea.vmem %s727_s29, 256  ;;  %p729_p1 = scmp.lt.s32.totalorder %s207_s20, %s727_s29 }
  0x60   : > { %p724_p2 = pnand %p722_p9, %p678_p0  ;;  %p730_p12 = scmp.lt.s32.totalorder %s728_s13, %s721_s7 }
  0x62   : > { %p725_p5 = pneg %p724_p2  ;;  %p731_p6 = por %p730_p12, %p729_p1 }
  0x64   : > { %p732_p8 = pnand %p731_p6, %p725_p5 }
  0x66   : > { %735 = shalt.err (!%p732_p8)
}
  0x67   : > { %601 = dma.hbm_to_vmem [thread:$0]  (!%p951_p11), %s960_s12, 128, %s207_s20, %s196_s26  }
  0x68   : > { %p1102_p4 = scmp.ne.s32.totalorder %s1096_s23, 0 }
  0x69   : > { %s1011_s11 = sand.u32 (!%p1102_p4), 1, %s802_s16   ;;  %p1103_p12 = scmp.ne.s32.totalorder (!%p1102_p4), %s1094_s21, 0 }
  0x6a   : > { %215 = sbr.rel (%p1102_p4) target bundleno = 566 (0x236), region = 36  ;;  %s1014_s14 = sshll.u32 (!%p1102_p4), %s1011_s11, 3 }
  0x6b   : > { %s218_s8 = scalar_lea.sflag (!%p1102_p4), [#allocation3], %s1011_s11  ;;  %s221_s28 = scalar_lea.vmem (!%p1102_p4), [#allocation2], %s1014_s14 }
  0x71   : > { %781 = dma.done.wait (%p1103_p12), %s218_s8, 128  }
  0x72   : > { %783 = vsyncadd (%p1103_p12), %s218_s8, 4294967168  ;;  %s226_s23 = sand.u32 1, %s867_s19   ;;  %s230_s12 = scalar_lea.vmem [#allocation5], %s1014_s14 }
  0x73   : > { %s227_s9 = scalar_lea.sflag [#allocation6], %s226_s23 }
  0x74   : > { %785 = dma.done.wait (%p1103_p12), %s227_s9, 128  }
  0x75   : > { %787 = vsyncadd (%p1103_p12), %s227_s9, 4294967168  ;;  %p1104_p11 = scmp.eq.s32.totalorder %s867_s19, 0 }
  0x77   : > { %789 = dma.done.wait (%p1104_p11), [#allocation6], 256   ;;  %p1105_p0 = pmov %p1104_p11 }
  0x78   : > { %v817_v0 = vmov 0.0   ;;  %vm818_vm0 = vmmov 0   ;;  %v819_v1 = vmov 0.0|0.0   ;;  %vm266_vm1 = vcmask 64512   ;;  %v265_v2 = vld [vmem:[%s221_s28] sm:$0xff]  ;;  %v264_v3 = vld [vmem:[%s230_s12] sm:$0xff] }
  0x79   : > { %791 = vsyncadd (%p1105_p0), [#allocation6], 4294967040  ;;  %566 = vmatprep.subr.mxu0 %v817_v0  ;;  %568 = vmatprep.mubr.msk.f32.mxu0 %vm818_vm0, %v817_v0  ;;  %v340_v4 = vld [vmem:[#allocation7] sm:$0xff]  ;;  %v341_v5 = vld [vmem:[#allocation7 + $0x8] sm:$0xff]  ;;  %vm349_vm2 = vcmask 130048   ;;  %s558_s26 = sshll.u32 %s867_s19, 7 }
  0x7a   : > { %578 = vmatprep.subr.bf16.mxu1 %v819_v1  ;;  %575 = vmatprep.mubr.msk.f32.mxu1 %vm818_vm0, %v817_v0  ;;  %v579_v6 = vpack.c.bf16 %v341_v5, %v340_v4  ;;  %v555_v9 = vld [vmem:[%s1087_s3] ss:$0 sm:$0xff]  ;;  %s263_s5 = scalar_lea.vmem [#allocation8], %s1014_s14  ;;  %s1040_s7 = scalar_lea.hbm %s1088_s4, %s558_s26 }
  0x7b   : > { %567 = vmatpush3.msra.mxu0 %v265_v2  ;;  %s439_s6 = sshll.u32 %s263_s5, 4  ;;  %s426_s25 = scalar_lea.sflag [#allocation4], %s1011_s11  ;;  %s1042_s6 = int_to_ptr.vmem [resolvable:$true] %s439_s6 }
  0x7c   : > { %569 = vmatmul.mubr.msk.f32.vlgmr.msra.gmra.mrb[0].mxu0 %vm266_vm1, %v264_v3  ;;  %580 = vmatpush3.bf16.msra.mxu1 %v579_v6  ;;  %s736_s29 = scalar_lea.vmem %s1042_s6, 128  ;;  %p1106_p13 = scmp.ne.s32.totalorder %s1100_s30, 0 }
  0x7d   : > { %p737_p10 = scmp.ne.s32.totalorder %s1042_s6, %s736_s29  ;;  %s820_s19 = smov [#allocation8]  }
  0x7e   : > { %s740_s13 = sshll.u32 %s820_s19, 4  ;;  %s741_s13 = int_to_ptr.vmem [resolvable:$false] %s740_s13 }
  0x7f   : > { %p738_p3 = pnand %p737_p10, %p1106_p13  ;;  %s742_s14 = scalar_lea.vmem %s741_s13, 256 }
  0x80   : > { %p743_p9 = scmp.lt.s32.totalorder %s1042_s6, %s741_s13  ;;  %p744_p2 = scmp.lt.s32.totalorder %s742_s14, %s736_s29 }
  0x81   : > { %p739_p7 = pneg %p738_p3 }
  0x82   : > { %p745_p5 = por %p744_p2, %p743_p9 }
  0x84   : > { %p746_p1 = pnand %p745_p5, %p739_p7 }
 0x14f   : > { %v336_v7 = vpop.f32.mrb[0].mxu0 }
 0x150   : > { %v570_v8 = vpop.f32.mrb[1].mxu0  ;;  %576 = vmatmul.mubr.msk.f32.vlgmr.msra.gmra.mrb[0].mxu1 %vm349_vm2, %v336_v7 }
 0x223   : > { %v419_v10 = vpop.f32.mrb[0].mxu1 }
 0x224   : > { %v420_v11 = vadd.f32 %v555_v9, %v419_v10  ;;  %v577_v12 = vpop.f32.mrb[1].mxu1 }
 0x226   : > { %v423_v13 = vmax.f32 %v420_v11, 0.0 }
 0x228   : > { %424 = vst [vmem:[%s263_s5] sm:$0xff] %v423_v13 }
 0x229   : > { %749 = shalt.err (!%p746_p1)
}
 0x22a   : > { %s750_s11 = scalar_lea.hbm %s1040_s7, 128  ;;  %s754_s23 = scalar_lea.hbm %s1088_s4, 256 }
 0x22b   : > { %p751_p6 = scmp.ne.s32.totalorder %s1040_s7, %s750_s11  ;;  %p755_p12 = scmp.lt.u32.totalorder %s1040_s7, %s1088_s4 }
 0x22c   : > { %p756_p11 = scmp.lt.u32.totalorder %s754_s23, %s750_s11  ;;  %p758_p10 = scmp.lt.u32.totalorder %s750_s11, %s1040_s7 }
 0x22d   : > { %p752_p8 = pnand %p751_p6, %p1106_p13 }
 0x22e   : > { %p757_p0 = por %p756_p11, %p755_p12 }
 0x22f   : > { %p753_p4 = pneg %p752_p8 }
 0x230   : > { %p759_p3 = por %p758_p10, %p757_p0 }
 0x232   : > { %p760_p7 = pnand %p759_p3, %p753_p4 }
 0x234   : > { %763 = shalt.err (!%p760_p7)
}
 0x235   : > { %589 = dma.vmem_to_hbm [thread:$0]  (%p1106_p13), %s1042_s6, 128, %s1040_s7, %s426_s25  }
 0x236 PF: > { %s451_s21 = sand.u32 1, %s798_s15   ;;  %p1107_p9 = scmp.ne.s32.totalorder %s1095_s22, 0 }
 0x237   : > { %p1108_p2 = scmp.ge.s32.totalorder %s810_s18, 2  ;;  %s452_s20 = scalar_lea.sflag [#allocation4], %s451_s21 }
 0x239   : > { %p603_p5 = pnand %p1108_p2, %p1107_p9 }
 0x23b   : > { %793 = dma.done.wait (!%p603_p5), %s452_s20, 128  }
 0x23c   : > { %795 = vsyncadd (!%p603_p5), %s452_s20, 4294967168  ;;  %p20_p1 = scmp.ge.s32.totalorder %s902_s27, 4   ;;  %s1109_s15 = smov %s802_s16 }
 0x23d   : > { %s1110_s16 = smov %s806_s17  ;;  %s1111_s17 = smov %s933_s24 }
 0x23e   : > { %s1112_s18 = smov %s902_s27  ;;  %22 = sbr.rel (!%p20_p1) target bundleno = 9 (0x9), region = 98 }
 0x245   :  { %457 = vsyncpa [#allocation3], 1 }
 0x246   :  { %459 = vsyncpa [#allocation3 + $0x1], 1 }
 0x247   :  { %460 = vsyncpa [#allocation6], 1 }
 0x248   :  { %462 = vsyncpa [#allocation6 + $0x1], 1 }
 0x249   :  { %463 = vsyncpa [#allocation4], 1 }
 0x24a   :  { %465 = vsyncpa [#allocation4 + $0x1], 1 }

</bundles_post_ra>
